<compile_context>
chip_gen: v7x
topology: tpu7x:2x2x1
jax: 0.10.0
libtpu: 0.0.40
codegen_flags: <defaults>
</compile_context>

<pallas_src>
import jax
import jax.numpy as jnp
from jax.experimental import pallas as pl
from jax.experimental.pallas import tpu as pltpu

EPS = 1e-8
LN_EPS = 1e-5
_VMEM_LIMIT = 64 * 1024 * 1024  # raise the scoped-VMEM default on all chip gens


def _compiler_params():
    return pltpu.CompilerParams(dimension_semantics=("parallel",),
                                vmem_limit_bytes=_VMEM_LIMIT)


def _pick_bt(B, cap=64):
    # Bt must be a multiple of 8 (sublane constraint on (.., Bt, lane) blocks) or
    # the full batch.  Prefer the largest tile <= cap that still leaves a grid of
    # >= 2 steps so both v7x TensorCores are fed; otherwise the largest divisor.
    if B % 8 != 0:
        return B
    cands = [bt for bt in range(8, min(B, cap) + 1, 8) if B % bt == 0]
    if not cands:
        return B
    ge2 = [bt for bt in cands if B // bt >= 2]
    return max(ge2) if ge2 else max(cands)


def _pick_unroll(K):
    for u in (8, 4, 2, 1):
        if K % u == 0:
            return u
    return 1


def _pick_k_chunk(K, Bt, width, budget_bytes=2 << 20):
    # Largest divisor of K whose (kc*Bt, width) f32 matmul result fits the budget.
    for kc in range(K, 0, -1):
        if K % kc == 0 and kc * Bt * width * 4 <= budget_bytes:
            return kc
    return K


# ---------------------------------------------------------------------------
# Encoder kernel (time-major): per-frame L2 norm + gated 1x1 conv with a single
# merged (L, 2N) weight:  relu(x @ U.T) * sigmoid(x @ V.T)
# ---------------------------------------------------------------------------
def _make_encoder_kernel(Bt, K, L, N):
    def kernel(mix_ref, w_uv_ref, w_out_ref, nc_out_ref):
        x = mix_ref[...].reshape(K * Bt, L)                       # time-major rows
        nrm = jnp.sqrt(jnp.sum(x * x, axis=-1, keepdims=True))    # (K*Bt, 1)
        xn = x / (nrm + EPS)
        y = jnp.dot(xn, w_uv_ref[...], preferred_element_type=jnp.float32)
        w = jax.nn.relu(y[:, :N]) * jax.nn.sigmoid(y[:, N:])
        w_out_ref[...] = w.reshape(K, Bt, N).astype(w_out_ref.dtype)
        nc_out_ref[...] = nrm.reshape(K, Bt, 1).astype(nc_out_ref.dtype)
    return kernel


def encoder(mixture_tm, w_uv, Bt):
    K, B, L = mixture_tm.shape
    N = w_uv.shape[1] // 2
    return pl.pallas_call(
        _make_encoder_kernel(Bt, K, L, N),
        out_shape=(jax.ShapeDtypeStruct((K, B, N), jnp.float32),
                   jax.ShapeDtypeStruct((K, B, 1), jnp.float32)),
        grid=(B // Bt,),
        in_specs=[pl.BlockSpec((K, Bt, L), lambda b: (0, b, 0)),
                  pl.BlockSpec((L, 2 * N), lambda b: (0, 0))],
        out_specs=(pl.BlockSpec((K, Bt, N), lambda b: (0, b, 0)),
                   pl.BlockSpec((K, Bt, 1), lambda b: (0, b, 0))),
        compiler_params=_compiler_params(),
    )(mixture_tm, w_uv)


# ---------------------------------------------------------------------------
# Separator kernel (time-major): LayerNorm + stacked (bi)LSTM with a fused
# forward/backward recurrence + K-chunked FC + softmax over speakers.
# ---------------------------------------------------------------------------
def _make_separator_kernel(Bt, K, N, H, num_layers, num_dirs, nspk, unroll, kc):
    D = num_dirs * H
    G = 4 * H
    n_chunks = K // kc

    def kernel(*refs):
        it = iter(refs)
        x_ref = next(it)                      # (K, Bt, N)   time-major input
        gamma_ref = next(it)                  # (1, N)
        beta_ref = next(it)                   # (1, N)
        lstm = [(next(it), next(it), next(it))
                for _ in range(num_layers * num_dirs)]   # (w_ih, w_hh, bias)
        wfc_ref = next(it)                    # (D, nspk*N)
        bfc_ref = next(it)                    # (1, nspk*N)
        out_ref = next(it)                    # (K, Bt, nspk*N)
        ln_s = next(it)                       # scratch (K, Bt, N)
        out_s = next(it)                      # scratch (K, Bt, D)
        gx_s = [next(it) for _ in range(num_dirs)]       # scratch (K, Bt, 4H)

        # --- LayerNorm over N (biased variance, eps=1e-5, like nn.LayerNorm) ---
        x2 = x_ref[...].reshape(K * Bt, N)
        mu = jnp.mean(x2, axis=-1, keepdims=True)
        var = jnp.mean((x2 - mu) ** 2, axis=-1, keepdims=True)
        ln = (x2 - mu) * jax.lax.rsqrt(var + LN_EPS) * gamma_ref[...] + beta_ref[...]
        ln_s[...] = ln.reshape(K, Bt, N)

        def cell(gates, c):
            # PyTorch gate order (i, f, g, o)
            i_g = jax.nn.sigmoid(gates[:, 0:H])
            f_g = jax.nn.sigmoid(gates[:, H:2 * H])
            g_g = jnp.tanh(gates[:, 2 * H:3 * H])
            o_g = jax.nn.sigmoid(gates[:, 3 * H:4 * H])
            c = f_g * c + i_g * g_g
            h = o_g * jnp.tanh(c)
            return h, c

        # --- stacked (bi)LSTM ---
        for layer in range(num_layers):
            in_dim = N if layer == 0 else D
            in_ref = ln_s if layer == 0 else out_s     # prev layer's output

            # Hoisted input projection: big MXU matmuls, K-chunked to cap the
            # live temporary (result streams into the gx_s scratch).
            for d in range(num_dirs):
                w_ih_ref, _, b_ref = lstm[layer * num_dirs + d]
                w_ih = w_ih_ref[...]
                b = b_ref[...]
                for c in range(n_chunks):
                    k0 = c * kc
                    xin = in_ref[k0:k0 + kc].reshape(kc * Bt, in_dim)
                    gx = jnp.dot(xin, w_ih,
                                 preferred_element_type=jnp.float32) + b
                    gx_s[d][k0:k0 + kc] = gx.reshape(kc, Bt, G)

            # Fused recurrence: forward (t) and backward (K-1-t) cells computed
            # back-to-back -> two independent dependency chains interleave on the
            # MXU/EUP.  Only h @ W_hh + gate math per timestep.
            whh = [lstm[layer * num_dirs + d][1][...] for d in range(num_dirs)]
            gxf = gx_s[0]

            if num_dirs == 2:
                gxb = gx_s[1]
                whh_f, whh_b = whh

                def step(i, carry):
                    h_f, c_f, h_b, c_b = carry
                    base = pl.multiple_of(i * unroll, unroll)
                    for j in range(unroll):     # manual unroll for LLO visibility
                        tf = base + j
                        tb = K - 1 - tf
                        g_f = gxf[tf] + jnp.dot(
                            h_f, whh_f, preferred_element_type=jnp.float32)
                        g_b = gxb[tb] + jnp.dot(
                            h_b, whh_b, preferred_element_type=jnp.float32)
                        h_f, c_f = cell(g_f, c_f)
                        h_b, c_b = cell(g_b, c_b)
                        out_s[pl.ds(tf, 1), :, 0:H] = h_f[None]
                        out_s[pl.ds(tb, 1), :, H:2 * H] = h_b[None]
                    return (h_f, c_f, h_b, c_b)

                init = (jnp.zeros((Bt, H), jnp.float32),
                        jnp.zeros((Bt, H), jnp.float32),
                        jnp.zeros((Bt, H), jnp.float32),
                        jnp.zeros((Bt, H), jnp.float32))
                jax.lax.fori_loop(0, K // unroll, step, init)
            else:
                whh_f = whh[0]

                def step(i, carry):
                    h_f, c_f = carry
                    base = pl.multiple_of(i * unroll, unroll)
                    for j in range(unroll):
                        tf = base + j
                        g_f = gxf[tf] + jnp.dot(
                            h_f, whh_f, preferred_element_type=jnp.float32)
                        h_f, c_f = cell(g_f, c_f)
                        out_s[pl.ds(tf, 1), :, 0:H] = h_f[None]
                    return (h_f, c_f)

                init = (jnp.zeros((Bt, H), jnp.float32),
                        jnp.zeros((Bt, H), jnp.float32))
                jax.lax.fori_loop(0, K // unroll, step, init)

        # --- FC to nspk*N and softmax over speakers, K-chunked ---
        wfc = wfc_ref[...]
        bfc = bfc_ref[...]
        for c in range(n_chunks):
            k0 = c * kc
            lo = out_s[k0:k0 + kc].reshape(kc * Bt, D)
            score = jnp.dot(lo, wfc, preferred_element_type=jnp.float32) + bfc
            cols = [score[:, s * N:(s + 1) * N] for s in range(nspk)]
            m = cols[0]
            for s in range(1, nspk):
                m = jnp.maximum(m, cols[s])
            exps = [jnp.exp(col - m) for col in cols]
            denom = exps[0]
            for s in range(1, nspk):
                denom = denom + exps[s]
            inv = 1.0 / denom
            for s in range(nspk):
                out_ref[k0:k0 + kc, :, s * N:(s + 1) * N] = (
                    (exps[s] * inv).reshape(kc, Bt, N).astype(out_ref.dtype))

    return kernel


def separator(mixture_w_tm, ln_gamma, ln_beta, lstm_params, w_fc, b_fc,
              H, num_layers, num_dirs, nspk, Bt):
    K, B, N = mixture_w_tm.shape
    D = num_dirs * H
    unroll = _pick_unroll(K)
    kc = _pick_k_chunk(K, Bt, max(4 * H, nspk * N))
    kernel = _make_separator_kernel(Bt, K, N, H, num_layers, num_dirs, nspk,
                                    unroll, kc)

    in_specs = [pl.BlockSpec((K, Bt, N), lambda b: (0, b, 0)),
                pl.BlockSpec((1, N), lambda b: (0, 0)),
                pl.BlockSpec((1, N), lambda b: (0, 0))]
    flat_lstm = []
    for (w_ih, w_hh, bias) in lstm_params:
        for arr in (w_ih, w_hh, bias):               # all 2-D, pre-transposed
            flat_lstm.append(arr)
            in_specs.append(pl.BlockSpec(arr.shape, lambda b: (0, 0)))
    in_specs.append(pl.BlockSpec(w_fc.shape, lambda b: (0, 0)))
    in_specs.append(pl.BlockSpec(b_fc.shape, lambda b: (0, 0)))

    return pl.pallas_call(
        kernel,
        out_shape=jax.ShapeDtypeStruct((K, B, nspk * N), jnp.float32),
        grid=(B // Bt,),
        in_specs=in_specs,
        out_specs=pl.BlockSpec((K, Bt, nspk * N), lambda b: (0, b, 0)),
        scratch_shapes=[pltpu.VMEM((K, Bt, N), jnp.float32),
                        pltpu.VMEM((K, Bt, D), jnp.float32)]
                       + [pltpu.VMEM((K, Bt, 4 * H), jnp.float32)
                          for _ in range(num_dirs)],
        compiler_params=_compiler_params(),
    )(mixture_w_tm, ln_gamma, ln_beta, *flat_lstm, w_fc, b_fc)


# ---------------------------------------------------------------------------
# Decoder kernel (time-major in, lane-dense slab out): norm_coef folded into the
# matmul LHS, one basis-signal dot per speaker (no concat copies).
# ---------------------------------------------------------------------------
def _make_decoder_kernel(Bt, K, N, L, nspk):
    def kernel(w_ref, mask_ref, nc_ref, wd_ref, out_ref):
        mw = w_ref[...]                       # (K, Bt, N)
        nc = nc_ref[...]                      # (K, Bt, 1)
        mask = mask_ref[...]                  # (K, Bt, nspk*N)
        wd = wd_ref[...]                      # (N, L)
        base = mw * nc                        # fold norm_coef pre-matmul (commutes)
        for s in range(nspk):
            src = (base * mask[:, :, s * N:(s + 1) * N]).reshape(K * Bt, N)
            est = jnp.dot(src, wd, preferred_element_type=jnp.float32)
            out_ref[:, :, s * L:(s + 1) * L] = (
                est.reshape(K, Bt, L).astype(out_ref.dtype))
    return kernel


def decoder(mixture_w_tm, est_mask_tm, norm_coef_tm, w_dec, nspk, Bt):
    K, B, N = mixture_w_tm.shape
    L = w_dec.shape[1]
    return pl.pallas_call(
        _make_decoder_kernel(Bt, K, N, L, nspk),
        out_shape=jax.ShapeDtypeStruct((K, B, nspk * L), jnp.float32),
        grid=(B // Bt,),
        in_specs=[pl.BlockSpec((K, Bt, N), lambda b: (0, b, 0)),
                  pl.BlockSpec((K, Bt, nspk * N), lambda b: (0, b, 0)),
                  pl.BlockSpec((K, Bt, 1), lambda b: (0, b, 0)),
                  pl.BlockSpec((N, L), lambda b: (0, 0))],
        out_specs=pl.BlockSpec((K, Bt, nspk * L), lambda b: (0, b, 0)),
        compiler_params=_compiler_params(),
    )(mixture_w_tm, est_mask_tm, norm_coef_tm, w_dec)


# ---------------------------------------------------------------------------
# Parameter init (kernel-friendly, pre-transposed layouts) + full forward
# ---------------------------------------------------------------------------
def init_params(key, L, N, H, num_layers, bidirectional, nspk):
    num_dirs = 2 if bidirectional else 1
    keys = jax.random.split(key, 8)

    def rnd(k, shape, scale=0.1):
        return scale * jax.random.normal(k, shape, jnp.float32)

    params = {
        # conv1d_U / conv1d_V weights merged & pre-transposed: (L, 2N) == [U.T|V.T]
        "enc_w_uv": rnd(keys[0], (L, 2 * N)),
        "ln_gamma": jnp.ones((1, N), jnp.float32),
        "ln_beta": jnp.zeros((1, N), jnp.float32),
        # fc weight pre-transposed: (num_dirs*H, nspk*N) == torch_fc_W.T
        "fc_w": rnd(keys[3], (num_dirs * H, nspk * N)),
        "fc_b": rnd(keys[4], (1, nspk * N)),
        # basis_signals weight pre-transposed: (N, L) == torch_dec_W.T
        "dec_w": rnd(keys[5], (N, L)),
    }
    lkeys = jax.random.split(keys[2], num_layers * num_dirs * 3)
    lstm, i = [], 0
    for layer in range(num_layers):
        in_dim = N if layer == 0 else num_dirs * H
        for _d in range(num_dirs):
            w_ih = rnd(lkeys[i], (in_dim, 4 * H)); i += 1   # == torch w_ih.T
            w_hh = rnd(lkeys[i], (H, 4 * H)); i += 1        # == torch w_hh.T
            bias = rnd(lkeys[i], (1, 4 * H)); i += 1        # == (b_ih + b_hh)[None]
            lstm.append((w_ih, w_hh, bias))
    params["lstm"] = lstm
    return params


def tasnet_forward(mixture, mixture_lengths, params, H, num_layers, num_dirs, nspk):
    # mixture_lengths accepted for API parity; full-length sequences assumed.
    del mixture_lengths
    B, K, L = mixture.shape
    N = params["dec_w"].shape[0]
    Bt = _pick_bt(B)
    # Layout plumbing only on the smallest tensors (L-wide); mixture_w / est_mask
    # stay time-major end-to-end and never take an HBM transpose round trip.
    mixture_tm = jnp.swapaxes(mixture, 0, 1)                     # (K, B, L)
    mixture_w_tm, norm_coef_tm = encoder(mixture_tm, params["enc_w_uv"], Bt)
    est_mask_tm = separator(mixture_w_tm, params["ln_gamma"], params["ln_beta"],
                            params["lstm"], params["fc_w"], params["fc_b"],
                            H, num_layers, num_dirs, nspk, Bt)   # (K, B, nspk*N)
    est_tm = decoder(mixture_w_tm, est_mask_tm, norm_coef_tm,
                     params["dec_w"], nspk, Bt)                  # (K, B, nspk*L)
    # Final permute (same op as the reference's .permute((0,2,1,3)).contiguous()).
    return jnp.transpose(est_tm.reshape(K, B, nspk, L), (1, 2, 0, 3))


if __name__ == "__main__":
    B, K, L, N = 2, 8, 32, 16
    H, num_layers, bidirectional, nspk = 32, 2, True, 2
    num_dirs = 2 if bidirectional else 1

    key = jax.random.PRNGKey(0)
    pkey, xkey = jax.random.split(key)
    params = init_params(pkey, L, N, H, num_layers, bidirectional, nspk)

    mixture = jax.random.normal(xkey, (B, K, L), jnp.float32)
    mixture_lengths = jnp.full((B,), K, jnp.int32)

    est_source = tasnet_forward(mixture, mixture_lengths, params,
                                H, num_layers, num_dirs, nspk)
    est_source = jax.block_until_ready(est_source)

    assert est_source.shape == (B, nspk, K, L), est_source.shape
    assert bool(jnp.all(jnp.isfinite(est_source)))
    print("KERNEL_OK")
</pallas_src>

<mosaic_0001>
module attributes {stable_mosaic.version = 11 : i64} {
  func.func @kernel(%arg0: i32, %arg1: memref<8x2x32xf32, #tpu.memory_space<vmem>>, %arg2: memref<32x32xf32, #tpu.memory_space<vmem>>, %arg3: memref<8x2x16xf32, #tpu.memory_space<vmem>>, %arg4: memref<8x2x1xf32, #tpu.memory_space<vmem>>) attributes {dimension_semantics = [#tpu.dimension_semantics<parallel>], iteration_bounds = array<i64: 1>, scalar_prefetch = 0 : i64, scratch_operands = 0 : i64, tpu.core_type = #tpu.core_type<tc>, window_params = [{transform_indices = @transform_0, window_bounds = array<i64: 8, 2, 32>}, {pipeline_mode = #tpu.pipeline_mode<synchronous>, transform_indices = @transform_1, window_bounds = array<i64: 32, 32>}, {transform_indices = @transform_2, window_bounds = array<i64: 8, 2, 16>}, {transform_indices = @transform_3, window_bounds = array<i64: 8, 2, 1>}]} {
    %c0 = arith.constant 0 : index
    %c0_0 = arith.constant 0 : index
    %c0_1 = arith.constant 0 : index
    %0 = vector.load %arg1[%c0, %c0_0, %c0_1] : memref<8x2x32xf32, #tpu.memory_space<vmem>>, vector<8x2x32xf32>
    %1 = vector.shape_cast %0 : vector<8x2x32xf32> to vector<16x32xf32>
    %2 = arith.mulf %1, %1 : vector<16x32xf32>
    %cst = arith.constant dense<0.000000e+00> : vector<16xf32>
    %3 = vector.multi_reduction <add>, %2, %cst [1] : vector<16x32xf32> to vector<16xf32>
    %4 = vector.shape_cast %3 : vector<16xf32> to vector<16x1xf32>
    %5 = math.sqrt %4 : vector<16x1xf32>
    %cst_2 = arith.constant 9.99999993E-9 : f32
    %6 = vector.broadcast %cst_2 : f32 to vector<16x1xf32>
    %7 = arith.addf %5, %6 : vector<16x1xf32>
    %8 = vector.broadcast %7 : vector<16x1xf32> to vector<16x32xf32>
    %9 = arith.divf %1, %8 : vector<16x32xf32>
    %c0_3 = arith.constant 0 : index
    %c0_4 = arith.constant 0 : index
    %10 = vector.load %arg2[%c0_3, %c0_4] : memref<32x32xf32, #tpu.memory_space<vmem>>, vector<32x32xf32>
    %cst_5 = arith.constant dense<0.000000e+00> : vector<16x32xf32>
    %11 = tpu.matmul %9, %10, %cst_5 {dimension_numbers = #tpu.dot_dimension_numbers<[1], [0], [0], [1], [0, 0, 1, 1], [], []>} : vector<16x32xf32>, vector<32x32xf32>, vector<16x32xf32> -> vector<16x32xf32>
    %12 = vector.extract_strided_slice %11 {offsets = [0, 0], sizes = [16, 16], strides = [1, 1]} : vector<16x32xf32> to vector<16x16xf32>
    %cst_6 = arith.constant 0.000000e+00 : f32
    %13 = vector.broadcast %cst_6 : f32 to vector<16x16xf32>
    %14 = arith.maximumf %12, %13 : vector<16x16xf32>
    %15 = vector.extract_strided_slice %11 {offsets = [0, 16], sizes = [16, 16], strides = [1, 1]} : vector<16x32xf32> to vector<16x16xf32>
    %16 = arith.negf %15 : vector<16x16xf32>
    %17 = math.exp %16 : vector<16x16xf32>
    %cst_7 = arith.constant 1.000000e+00 : f32
    %18 = vector.broadcast %cst_7 : f32 to vector<16x16xf32>
    %19 = arith.addf %18, %17 : vector<16x16xf32>
    %20 = arith.divf %18, %19 : vector<16x16xf32>
    %21 = arith.mulf %14, %20 : vector<16x16xf32>
    %22 = vector.shape_cast %21 : vector<16x16xf32> to vector<8x2x16xf32>
    %c0_8 = arith.constant 0 : index
    %c0_9 = arith.constant 0 : index
    %c0_10 = arith.constant 0 : index
    %23 = vector.load %arg3[%c0_8, %c0_9, %c0_10] : memref<8x2x16xf32, #tpu.memory_space<vmem>>, vector<8x2x16xf32>
    tpu.vector_store %arg3[%c0_8, %c0_9, %c0_10], %22 {strides = array<i32>} : memref<8x2x16xf32, #tpu.memory_space<vmem>>, vector<8x2x16xf32>,
    %24 = vector.shape_cast %5 : vector<16x1xf32> to vector<8x2x1xf32>
    %c0_11 = arith.constant 0 : index
    %c0_12 = arith.constant 0 : index
    %c0_13 = arith.constant 0 : index
    %25 = vector.load %arg4[%c0_11, %c0_12, %c0_13] : memref<8x2x1xf32, #tpu.memory_space<vmem>>, vector<8x2x1xf32>
    tpu.vector_store %arg4[%c0_11, %c0_12, %c0_13], %24 {strides = array<i32>} : memref<8x2x1xf32, #tpu.memory_space<vmem>>, vector<8x2x1xf32>,
    return
  }
  func.func @transform_0(%arg0: i32) -> (i32, i32, i32) {
    %c0_i32 = arith.constant 0 : i32
    %c0_i32_0 = arith.constant 0 : i32
    %c0_i32_1 = arith.constant 0 : i32
    return %c0_i32, %arg0, %c0_i32_0 : i32, i32, i32
  }
  func.func @transform_1(%arg0: i32) -> (i32, i32) {
    %c0_i32 = arith.constant 0 : i32
    %c0_i32_0 = arith.constant 0 : i32
    %c0_i32_1 = arith.constant 0 : i32
    return %c0_i32, %c0_i32_0 : i32, i32
  }
  func.func @transform_2(%arg0: i32) -> (i32, i32, i32) {
    %c0_i32 = arith.constant 0 : i32
    %c0_i32_0 = arith.constant 0 : i32
    %c0_i32_1 = arith.constant 0 : i32
    return %c0_i32, %arg0, %c0_i32_0 : i32, i32, i32
  }
  func.func @transform_3(%arg0: i32) -> (i32, i32, i32) {
    %c0_i32 = arith.constant 0 : i32
    %c0_i32_0 = arith.constant 0 : i32
    %c0_i32_1 = arith.constant 0 : i32
    return %c0_i32, %arg0, %c0_i32_0 : i32, i32, i32
  }
}

</mosaic_0001>

<bundles_post_ra>
// kernel: tpu_custom_call.1
= control target key start
LH: loop header
LB: loop body
LE: loop exit
PB: predicated region body
PF: predicated region fallthrough
CT: control target
= control target key end

     0   :  { %9 = vsyncpa [#allocation3], 0  ;;  %s858_s0 = inlined_call_operand.hbm [shape: f32[8,2,32], index: 0, kind: input, shape index: {}]   ;;  %s859_s1 = inlined_call_operand.hbm [shape: f32[32,32], index: 1, kind: input, shape index: {}]   ;;  %s860_s2 = inlined_call_operand.hbm [shape: f32[8,2,16], index: 2, kind: output, shape index: {0}]   ;;  %s861_s3 = inlined_call_operand.hbm [shape: f32[8,2,1], index: 3, kind: output, shape index: {1}]  }
   0x1   :  { %10 = vsyncpa [#allocation6], 0 }
   0x2   :  { %11 = vsyncpa [#allocation4], 0 }
   0x3   :  { %12 = vsyncpa [#allocation9], 0  ;;  %s686_s12 = smov [#allocation2]   ;;  %s590_s16 = scalar_lea.hbm %s858_s0, 256 }
   0x4   :  { %s18_s13 = sshll.u32 %s686_s12, 4  ;;  %p591_p0 = scmp.ne.s32.totalorder %s858_s0, %s590_s16  ;;  %s19_s13 = int_to_ptr.vmem [resolvable:$true] %s18_s13 }
   0x5   :  { %p594_p1 = scmp.lt.u32.totalorder %s590_s16, %s858_s0 }
   0x7   :  { %p596_p2 = pnand %p594_p1, %p591_p0 }
   0x9   :  { %599 = shalt.err (!%p596_p2)
}
   0xa   :  { %s600_s21 = scalar_lea.vmem %s19_s13, 256  ;;  %p605_p4 = scmp.lt.s32.totalorder %s19_s13, %s19_s13 }
   0xb   :  { %p601_p3 = scmp.ne.s32.totalorder %s19_s13, %s600_s21  ;;  %p606_p5 = scmp.lt.s32.totalorder %s600_s21, %s600_s21 }
   0xd   :  { %p607_p6 = por %p606_p5, %p605_p4 }
   0xf   :  { %p608_p7 = pnand %p607_p6, %p601_p3 }
  0x11   :  { %611 = shalt.err (!%p608_p7)
}
  0x12   :  { %s687_s22 = smov 32   ;;  %s688_s23 = smov 2  }
  0x13   :  { %24 = dma.hbm_to_vmem [thread:$0]  %s858_s0, 256, %s19_s13, [#allocation3], %s687_s22, %s687_s22, %s688_s23  }
  0x14   :  { %s689_s26 = smov [#allocation5]   ;;  %s612_s30 = scalar_lea.hbm %s859_s1, 512 }
  0x15   :  { %s30_s27 = sshll.u32 %s689_s26, 4  ;;  %p613_p8 = scmp.ne.s32.totalorder %s859_s1, %s612_s30  ;;  %s31_s27 = int_to_ptr.vmem [resolvable:$true] %s30_s27 }
  0x16   :  { %p616_p9 = scmp.lt.u32.totalorder %s612_s30, %s859_s1 }
  0x18   :  { %p618_p10 = pnand %p616_p9, %p613_p8 }
  0x1a   :  { %621 = shalt.err (!%p618_p10)
}
  0x1b   :  { %s622_s8 = scalar_lea.vmem %s31_s27, 512  ;;  %p627_p12 = scmp.lt.s32.totalorder %s31_s27, %s31_s27 }
  0x1c   :  { %p623_p11 = scmp.ne.s32.totalorder %s31_s27, %s622_s8  ;;  %p628_p13 = scmp.lt.s32.totalorder %s622_s8, %s622_s8 }
  0x1e   :  { %p629_p0 = por %p628_p13, %p627_p12 }
  0x20   :  { %p630_p1 = pnand %p629_p0, %p623_p11 }
  0x22   :  { %633 = shalt.err (!%p630_p1)
}
  0x23   :  { %s690_s0 = smov 128   ;;  %s691_s9 = smov 8  }
  0x24   :  { %36 = dma.hbm_to_vmem [thread:$0]  %s859_s1, 512, %s31_s27, [#allocation6], %s690_s0, %s690_s0, %s691_s9  }
  0x25   :  { %678 = dma.done.wait [#allocation3], 256  }
  0x26   :  { %679 = vsyncadd [#allocation3], 4294967040 }
  0x27   :  { %680 = dma.done.wait [#allocation6], 512  }
  0x28   :  { %681 = vsyncadd [#allocation6], 4294966784  ;;  %v72_v0 = vlaneseq  ;;  %v692_v1 = vmov 1983009808   ;;  %v749_v5 = vld [vmem:[#allocation2] sm:$0x3] }
  0x29   :  { %v70_v2 = vunpack.c.l.s4 %v692_v1  ;;  %v751_v6 = vld [vmem:[#allocation2 + $0x2] sm:$0x3]  ;;  %v753_v7 = vld [vmem:[#allocation2 + $0x4] sm:$0x3]  ;;  %v755_v8 = vld [vmem:[#allocation2 + $0x6] sm:$0x3]  ;;  %v51_v9 = vmul.f32 %v749_v5, %v749_v5 }
  0x2a   :  { %v747_v4 = vshrl.u32 %v72_v0, 7  ;;  %v52_v10 = vmul.f32 %v751_v6, %v751_v6  ;;  %v53_v11 = vmul.f32 %v753_v7, %v753_v7  ;;  %v766_v13 = vld [vmem:[#allocation2 + $0x8] sm:$0x3]  ;;  %v768_v14 = vld [vmem:[#allocation2 + $0xa] sm:$0x3]  ;;  %v54_v15 = vmul.f32 %v755_v8, %v755_v8  ;;  %v208_v34 = vld [vmem:[#allocation5] sm:$0xff] }
  0x2b   :  { %v71_v3 = vunpack.c.0.s8 %v70_v2  ;;  %v772_v16 = vld [vmem:[#allocation2 + $0xc] sm:$0x3]  ;;  %v774_v17 = vld [vmem:[#allocation2 + $0xe] sm:$0x3]  ;;  %v55_v18 = vmul.f32 %v766_v13, %v766_v13  ;;  %v56_v19 = vmul.f32 %v768_v14, %v768_v14  ;;  %vm103_vm0 = vcmask 261120   ;;  %v209_v35 = vld [vmem:[#allocation5 + $0x8] sm:$0xff] }
  0x2c   :  { %v67_v20 = vcombine.low %v51_v9, %v52_v10  ;;  %v57_v21 = vmul.f32 %v772_v16, %v772_v16  ;;  %v58_v22 = vmul.f32 %v774_v17, %v774_v17  ;;  %v68_v23 = vcombine.low %v53_v11, %v54_v15  ;;  %v210_v36 = vld [vmem:[#allocation5 + $0x10] sm:$0xff]  ;;  %v211_v38 = vld [vmem:[#allocation5 + $0x18] sm:$0xff]  ;;  %s697_s1 = smov [#allocation8]   ;;  %s698_s13 = smov 112  }
  0x2d   :  { %v764_v12 = vsub.s32 %v71_v3, %v747_v4  ;;  %v84_v24 = vcombine.low %v55_v18, %v56_v19  ;;  %v540_v37 = vpack.c.bf16 %v209_v35, %v208_v34  ;;  %v544_v39 = vpack.c.bf16 %v211_v38, %v210_v36  ;;  %s502_s12 = sshll.u32 %s697_s1, 4  ;;  %s503_s12 = int_to_ptr.vmem [resolvable:$true] %s502_s12 }
  0x2e   :  { %v85_v26 = vcombine.low %v57_v21, %v58_v22  ;;  %v693_v41 = vmov 269488144   ;;  %v694_v43 = vmov 842150450   ;;  %v695_v45 = vmov 1414812756   ;;  %p639_p3 = scmp.lt.s32.totalorder %s503_s12, %s503_s12 }
  0x2f   :  { %v75_v25 = vrot.slane %v67_v20, %v764_v12  ;;  %v82_v27 = vrot.slane %v68_v23, %v764_v12  ;;  %v92_v28 = vrot.slane %v84_v24, %v764_v12  ;;  %541 = vmatprep.subr.bf16.mxu0 %v540_v37  ;;  %v129_v42 = vunpack.c.l.s4 %v693_v41  ;;  %s634_s14 = scalar_lea.vmem %s503_s12, 256 }
  0x30   :  { %v99_v29 = vrot.slane %v85_v26, %v764_v12  ;;  %543 = vmatpush3.bf16.msra.mxu0 %v540_v37  ;;  %v136_v44 = vunpack.c.l.s4 %v694_v43  ;;  %v143_v46 = vunpack.c.l.s4 %v695_v45  ;;  %v696_v48 = vmov 1987475062   ;;  %p635_p2 = scmp.ne.s32.totalorder %s503_s12, %s634_s14  ;;  %p640_p4 = scmp.lt.s32.totalorder %s634_s14, %s634_s14 }
  0x31   :  { %v83_v30 = vcombine.low %v75_v25, %v82_v27  ;;  %545 = vmatprep.subr.bf16.mxu0 %v544_v39  ;;  %v150_v49 = vunpack.c.l.s4 %v696_v48  ;;  %v130_v50 = vunpack.c.0.s8 %v129_v42  ;;  %vm476_vm3 = vcmask 1024  }
  0x32   :  { %v100_v31 = vcombine.low %v92_v28, %v99_v29  ;;  %v137_v51 = vunpack.c.0.s8 %v136_v44  ;;  %v144_v52 = vunpack.c.0.s8 %v143_v46  ;;  %p641_p5 = por %p640_p4, %p639_p3 }
  0x33   :  { %v104_v32 = vsel %vm103_vm0, %v83_v30, 0.0  ;;  %v151_v53 = vunpack.c.0.s8 %v150_v49  ;;  %v133_v55 = vsub.s32 %v130_v50, %v747_v4 }
  0x34   :  { %105 = vadd.xlane.f32.xlu0 %v104_v32  ;;  %v107_v33 = vsel %vm103_vm0, %v100_v31, 0.0  ;;  %547 = vmatpush3.bf16.msra.mxu0 %v544_v39  ;;  %v140_v56 = vsub.s32 %v137_v51, %v747_v4  ;;  %v147_v57 = vsub.s32 %v144_v52, %v747_v4  ;;  %p642_p6 = pnand %p641_p5, %p635_p2 }
  0x35   :  { %v154_v59 = vsub.s32 %v151_v53, %v747_v4 }
  0x38   :  { %108 = vadd.xlane.f32.xlu0 %v107_v33 }
  0xc1   :  { %v106_v40 = vpop.xlane.xlu0 %105 }
  0xc2   :  { %562 = vrsqrt.f32 %v106_v40  ;;  %vm112_vm1 = vcmp.eq.f32.partialorder %v106_v40, inf  ;;  %v115_v60 = vand.u32 2147483648, %v106_v40  ;;  %vm114_vm2 = vcmp.eq.f32.partialorder %v106_v40, 0.0 }
  0xc5   :  { %v109_v47 = vpop.xlane.xlu0 %108 }
  0xc6   :  { %564 = vrsqrt.f32 %v109_v47  ;;  %vm119_vm4 = vcmp.eq.f32.partialorder %v109_v47, inf  ;;  %v122_v11 = vand.u32 2147483648, %v109_v47  ;;  %vm121_vm5 = vcmp.eq.f32.partialorder %v109_v47, 0.0 }
  0xcc   :  { %v563_v54 = vpop.eup %562 }
  0xcd   :  { %v111_v58 = vmul.f32 %v563_v54, %v106_v40 }
  0xcf   :  { %v113_v61 = vsel %vm112_vm1, %v106_v40, %v111_v58 }
  0xd0   :  { %v565_v62 = vpop.eup %564  ;;  %v116_v63 = vsel %vm114_vm2, %v115_v60, %v113_v61 }
  0xd1   :  { %v124_v0 = vadd.f32 1e-08, %v116_v63  ;;  %v418_v1 = vrot.slane %v116_v63, %v133_v55  ;;  %v425_v2 = vrot.slane %v116_v63, %v140_v56  ;;  %v432_v3 = vrot.slane %v116_v63, %v147_v57 }
  0xd2   :  { %v439_v9 = vrot.slane %v116_v63, %v154_v59  ;;  %v118_v10 = vmul.f32 %v565_v62, %v109_v47 }
  0xd3   :  { %477 = vst.msk [vmem:[#allocation8] sm:$0x3] %vm476_vm3, %v418_v1  ;;  %478 = vst.msk [vmem:[#allocation8 + $0x2] sm:$0x3] %vm476_vm3, %v425_v2  ;;  %v134_v4 = vrot.slane %v124_v0, %v133_v55  ;;  %v141_v15 = vrot.slane %v124_v0, %v140_v56  ;;  %v148_v19 = vrot.slane %v124_v0, %v147_v57 }
  0xd4   :  { %479 = vst.msk [vmem:[#allocation8 + $0x4] sm:$0x3] %vm476_vm3, %v432_v3  ;;  %v120_v18 = vsel %vm119_vm4, %v109_v47, %v118_v10  ;;  %480 = vst.msk [vmem:[#allocation8 + $0x6] sm:$0x3] %vm476_vm3, %v439_v9  ;;  %v155_v21 = vrot.slane %v124_v0, %v154_v59 }
  0xd5   :  { %v123_v20 = vsel %vm121_vm5, %v122_v11, %v120_v18  ;;  %566 = vrcp.f32 %v134_v4 }
  0xd6   :  { %v125_v22 = vadd.f32 1e-08, %v123_v20  ;;  %v446_v23 = vrot.slane %v123_v20, %v133_v55  ;;  %v453_v24 = vrot.slane %v123_v20, %v140_v56  ;;  %v460_v25 = vrot.slane %v123_v20, %v147_v57 }
  0xd7   :  { %v467_v26 = vrot.slane %v123_v20, %v154_v59  ;;  %568 = vrcp.f32 %v141_v15 }
  0xd8   :  { %481 = vst.msk [vmem:[#allocation8 + $0x8] sm:$0x3] %vm476_vm3, %v446_v23  ;;  %482 = vst.msk [vmem:[#allocation8 + $0xa] sm:$0x3] %vm476_vm3, %v453_v24  ;;  %570 = vrcp.f32 %v148_v19  ;;  %v162_v27 = vrot.slane %v125_v22, %v133_v55  ;;  %v169_v28 = vrot.slane %v125_v22, %v140_v56  ;;  %v176_v29 = vrot.slane %v125_v22, %v147_v57 }
  0xd9   :  { %483 = vst.msk [vmem:[#allocation8 + $0xc] sm:$0x3] %vm476_vm3, %v460_v25  ;;  %484 = vst.msk [vmem:[#allocation8 + $0xe] sm:$0x3] %vm476_vm3, %v467_v26  ;;  %572 = vrcp.f32 %v155_v21  ;;  %v183_v30 = vrot.slane %v125_v22, %v154_v59 }
  0xda   :  { %574 = vrcp.f32 %v162_v27 }
  0xdb   :  { %576 = vrcp.f32 %v169_v28 }
  0xdc   :  { %578 = vrcp.f32 %v176_v29 }
  0xdd   :  { %580 = vrcp.f32 %v183_v30 }
  0xdf   :  { %v567_v31 = vpop.eup %566 }
  0xe0   :  { %v193_v32 = vmul.f32 %v567_v31, %v749_v5 }
  0xe1   :  { %v569_v33 = vpop.eup %568 }
  0xe2   :  { %v571_v34 = vpop.eup %570  ;;  %v195_v35 = vmul.f32 %v569_v33, %v751_v6 }
  0xe3   :  { %v573_v36 = vpop.eup %572  ;;  %v197_v37 = vmul.f32 %v571_v34, %v753_v7 }
  0xe4   :  { %v575_v38 = vpop.eup %574  ;;  %v199_v39 = vmul.f32 %v573_v36, %v755_v8  ;;  %v220_v40 = vcombine.low %v193_v32, %v195_v35 }
  0xe5   :  { %v577_v41 = vpop.eup %576  ;;  %v201_v42 = vmul.f32 %v575_v38, %v766_v13 }
  0xe6   :  { %v579_v43 = vpop.eup %578  ;;  %v221_v44 = vcombine.low %v197_v37, %v199_v39  ;;  %v228_v45 = vrot.slane %v220_v40, %v764_v12  ;;  %v203_v5 = vmul.f32 %v577_v41, %v768_v14 }
  0xe7   :  { %v581_v46 = vpop.eup %580  ;;  %v205_v47 = vmul.f32 %v579_v43, %v772_v16 }
  0xe8   :  { %v235_v6 = vrot.slane %v221_v44, %v764_v12  ;;  %v207_v7 = vmul.f32 %v581_v46, %v774_v17  ;;  %v237_v48 = vcombine.low %v201_v42, %v203_v5 }
  0xea   :  { %v236_v49 = vcombine.low %v228_v45, %v235_v6  ;;  %v238_v8 = vcombine.low %v205_v47, %v207_v7  ;;  %v245_v50 = vrot.slane %v237_v48, %v764_v12 }
  0xec   :  { %537 = vmatprep.mubr.msk.f32.mxu0 %vm103_vm0, %v236_v49  ;;  %v252_v13 = vrot.slane %v238_v8, %v764_v12 }
  0xee   :  { %v253_v51 = vcombine.low %v245_v50, %v252_v13 }
  0xf0   :  { %538 = vmatmul.mubr.msk.f32.vlgmr.msra.gmra.mrb[0].mxu0 %vm103_vm0, %v253_v51 }
 0x1c3   :  { %v539_v14 = vpop.f32.mrb[0].mxu0 }
 0x1c4   :  { %v522_v52 = vmul.f32 -1.442695, %v539_v14  ;;  %v324_v53 = vpop.f32.mrb[1].mxu0 }
 0x1c5   :  { %v521_v16 = vmul.f32 -1.442695, %v324_v53 }
 0x1c6   :  { %582 = vpow2.f32 %v522_v52 }
 0x1c7   :  { %584 = vpow2.f32 %v521_v16 }
 0x1d0   :  { %v583_v54 = vpop.eup %582 }
 0x1d1   :  { %v585_v17 = vpop.eup %584  ;;  %v342_v56 = vadd.f32 1.0, %v583_v54 }
 0x1d2   :  { %v341_v55 = vadd.f32 1.0, %v585_v17 }
 0x1d4   :  { %586 = vrcp.f32 %v341_v55 }
 0x1d5   :  { %588 = vrcp.f32 %v342_v56 }
 0x1de   :  { %v587_v57 = vpop.eup %586 }
 0x1df   :  { %349 = vrot.lane.b32.xlu1 %v587_v57, %s698_s13 }
 0x1e0   :  { %645 = shalt.err (!%p642_p6)
}
 0x1e1   :  { %s646_s17 = scalar_lea.hbm %s861_s3, 256 }
 0x1e2   :  { %p647_p7 = scmp.ne.s32.totalorder %s861_s3, %s646_s17  ;;  %p650_p8 = scmp.lt.u32.totalorder %s646_s17, %s861_s3 }
 0x1e4   :  { %p652_p9 = pnand %p650_p8, %p647_p7 }
 0x1e6   :  { %655 = shalt.err (!%p652_p9)
}
 0x1e7   :  { %508 = dma.vmem_to_hbm [thread:$0]  %s503_s12, 256, %s861_s3, [#allocation9], %s687_s22, %s687_s22, %s688_s23   ;;  %v589_v58 = vpop.eup %588  ;;  %v333_v59 = vmax.f32 %v324_v53, 0.0  ;;  %vm401_vm6 = vcmask 123904   ;;  %v334_v62 = vmax.f32 %v539_v14, 0.0 }
 0x1e8   :  { %351 = vrot.lane.b32.xlu1 %v589_v58, %s698_s13  ;;  %s699_s3 = smov [#allocation7]  }
 0x1e9   :  { %s490_s26 = sshll.u32 %s699_s3, 4  ;;  %s491_s26 = int_to_ptr.vmem [resolvable:$true] %s490_s26 }
 0x1ea   :  { %s656_s27 = scalar_lea.vmem %s491_s26, 256  ;;  %p661_p11 = scmp.lt.s32.totalorder %s491_s26, %s491_s26 }
 0x1eb   :  { %p657_p10 = scmp.ne.s32.totalorder %s491_s26, %s656_s27  ;;  %p662_p12 = scmp.lt.s32.totalorder %s656_s27, %s656_s27 }
 0x1ed   :  { %p663_p13 = por %p662_p12, %p661_p11 }
 0x1ef   :  { %p664_p0 = pnand %p663_p13, %p657_p10 }
 0x251   :  { %v350_v60 = vpop.permute.xlu1 %349 }
 0x252   :  { %v355_v61 = vmul.f32 %v350_v60, %v333_v59 }
 0x254   :  { %v359_v63 = vcombine.high %v355_v61, %v355_v61  ;;  %v366_v0 = vrot.slane %v355_v61, %v764_v12 }
 0x256   :  { %v373_v2 = vrot.slane %v359_v63, %v764_v12  ;;  %v374_v3 = vcombine.high %v366_v0, %v366_v0  ;;  %402 = vst.msk [vmem:[#allocation7] sm:$0x3] %vm401_vm6, %v366_v0 }
 0x258   :  { %v375_v10 = vcombine.high %v373_v2, %v373_v2  ;;  %403 = vst.msk [vmem:[#allocation7 + $0x2] sm:$0x3] %vm401_vm6, %v374_v3  ;;  %404 = vst.msk [vmem:[#allocation7 + $0x4] sm:$0x3] %vm401_vm6, %v373_v2 }
 0x25a   :  { %v352_v1 = vpop.permute.xlu1 %351  ;;  %405 = vst.msk [vmem:[#allocation7 + $0x6] sm:$0x3] %vm401_vm6, %v375_v10 }
 0x25b   :  { %v356_v9 = vmul.f32 %v352_v1, %v334_v62 }
 0x25d   :  { %v376_v11 = vcombine.high %v356_v9, %v356_v9  ;;  %v383_v4 = vrot.slane %v356_v9, %v764_v12 }
 0x25f   :  { %v390_v15 = vrot.slane %v376_v11, %v764_v12  ;;  %v391_v18 = vcombine.high %v383_v4, %v383_v4  ;;  %406 = vst.msk [vmem:[#allocation7 + $0x8] sm:$0x3] %vm401_vm6, %v383_v4 }
 0x261   :  { %v392_v19 = vcombine.high %v390_v15, %v390_v15  ;;  %407 = vst.msk [vmem:[#allocation7 + $0xa] sm:$0x3] %vm401_vm6, %v391_v18  ;;  %408 = vst.msk [vmem:[#allocation7 + $0xc] sm:$0x3] %vm401_vm6, %v390_v15 }
 0x263   :  { %409 = vst.msk [vmem:[#allocation7 + $0xe] sm:$0x3] %vm401_vm6, %v392_v19 }
 0x264   :  { %667 = shalt.err (!%p664_p0)
}
 0x265   :  { %s668_s30 = scalar_lea.hbm %s860_s2, 256 }
 0x266   :  { %p669_p1 = scmp.ne.s32.totalorder %s860_s2, %s668_s30  ;;  %p672_p2 = scmp.lt.u32.totalorder %s668_s30, %s860_s2 }
 0x268   :  { %p674_p3 = pnand %p672_p2, %p669_p1 }
 0x26a   :  { %677 = shalt.err (!%p674_p3)
}
 0x26b   :  { %496 = dma.vmem_to_hbm [thread:$0]  %s491_s26, 256, %s860_s2, [#allocation4], %s687_s22, %s687_s22, %s688_s23  }
 0x26c   :  { %682 = dma.done.wait [#allocation4], 256  }
 0x26d   :  { %683 = vsyncadd [#allocation4], 4294967040 }
 0x26e   :  { %684 = dma.done.wait [#allocation9], 256  }
 0x26f   :  { %685 = vsyncadd [#allocation9], 4294967040 }
 0x270   :  { %515 = vsyncpa [#allocation3], 1 }
 0x271   :  { %516 = vsyncpa [#allocation6], 1 }
 0x272   :  { %517 = vsyncpa [#allocation4], 1 }
 0x273   :  { %518 = vsyncpa [#allocation9], 1 }

</bundles_post_ra>
